<compile_context>
chip_gen: v5e
topology: v5e:2x2
jax: 0.10.0
libtpu: 0.0.40
codegen_flags: <defaults>
</compile_context>

<pallas_src>
import functools

import jax
import jax.numpy as jnp
from jax.experimental import pallas as pl
from jax.experimental.pallas import tpu as pltpu


def _affine_T_kernel(w_ref, b_ref, xT_ref, oT_ref):
    # Lane-dense affine: xT_ref is [2, tb] (batch on the lane axis).
    #   yT[n, :] = wf[0, n] * xT[0, :] + wf[1, n] * xT[1, :] + bf[n]
    # wf is stored row-major in SMEM as [wf00, wf01, wf10, wf11] ([in, out]).
    xT = xT_ref[...]
    x0 = xT[0:1, :]
    x1 = xT[1:2, :]
    y0 = w_ref[0] * x0 + w_ref[2] * x1 + b_ref[0]
    y1 = w_ref[1] * x0 + w_ref[3] * x1 + b_ref[1]
    oT_ref[...] = jnp.concatenate([y0, y1], axis=0).astype(oT_ref.dtype)


def fold_params(params):
    """Fold fc3(fc2(fc1(x))) into one affine map  y = x @ Wf + bf.

    Hoist this out of the per-step path: call once per parameter set.
    Returns (wf_flat [4], bf [2]) with Wf in [in, out] layout, row-major.
    """
    w1, b1 = params["w1"], params["b1"]
    w2, b2 = params["w2"], params["b2"]
    w3, b3 = params["w3"], params["b3"]
    wf = w1.T @ w2.T @ w3.T                      # [in, out]
    bf = (b1 @ w2.T + b2) @ w3.T + b3            # [out]
    return wf.reshape(-1), bf


def _choose_tile(batch, tile_b):
    """Lane-axis tile: full array for small B, else a multiple of 128 sized so
    there are at least two grid steps (v7x megacore) and capped at tile_b."""
    if batch <= 256:
        return batch                              # single full-array block
    half = -(-batch // 2)                         # ceil(B / 2)
    tb = -(-half // 128) * 128                    # round up to lane width
    return max(128, min(tb, tile_b))


@functools.partial(jax.jit, static_argnames=("tile_b",))
def net_forward(x, wf_flat, bf, tile_b=131072):
    """x: [B, 2] float32. wf_flat: [4], bf: [2] from fold_params."""
    B, F = x.shape
    Fo = bf.shape[0]

    tb = _choose_tile(B, tile_b)
    grid = (pl.cdiv(B, tb),)

    xT = x.T  # [F, B] — batch on the 128-lane axis (layout plumbing, fused by XLA)

    yT = pl.pallas_call(
        _affine_T_kernel,
        out_shape=jax.ShapeDtypeStruct((Fo, B), x.dtype),
        grid_spec=pltpu.PrefetchScalarGridSpec(
            num_scalar_prefetch=0,
            grid=grid,
            in_specs=[
                pl.BlockSpec(memory_space=pltpu.MemorySpace.SMEM),  # wf (4,) scalars
                pl.BlockSpec(memory_space=pltpu.MemorySpace.SMEM),  # bf (2,) scalars
                pl.BlockSpec((F, tb), lambda i: (0, i)),            # streamed xT tile
            ],
            out_specs=pl.BlockSpec((Fo, tb), lambda i: (0, i)),
        ),
        compiler_params=pltpu.CompilerParams(
            dimension_semantics=("parallel",)),
        cost_estimate=pl.CostEstimate(
            flops=8 * B,
            transcendentals=0,
            bytes_accessed=(F + Fo) * 4 * B + (wf_flat.size + bf.size) * 4),
    )(wf_flat, bf, xT)

    return yT.T  # back to [B, Fo]


def init_params(key):
    """Deterministic init mimicking nn.Linear default: U(-1/sqrt(fan_in), +)."""
    params = {}
    fan_in = 2
    bound = 1.0 / jnp.sqrt(fan_in)
    keys = jax.random.split(key, 6)
    for i, name in enumerate(["1", "2", "3"]):
        wk, bk = keys[2 * i], keys[2 * i + 1]
        params["w" + name] = jax.random.uniform(
            wk, (2, 2), jnp.float32, minval=-bound, maxval=bound)
        params["b" + name] = jax.random.uniform(
            bk, (2,), jnp.float32, minval=-bound, maxval=bound)
    return params


def net_reference(x, params):
    h = x @ params["w1"].T + params["b1"]
    h = h @ params["w2"].T + params["b2"]
    h = h @ params["w3"].T + params["b3"]
    return h


if __name__ == "__main__":
    key = jax.random.PRNGKey(0)
    pkey, xkey = jax.random.split(key)

    params = init_params(pkey)
    x = jax.random.normal(xkey, (8, 2), jnp.float32)   # batch=8, features=2

    # Fold once per parameter set (hoisted out of the forward path).
    wf_flat, bf = fold_params(params)

    out = net_forward(x, wf_flat, bf)
    out = jax.block_until_ready(out)

    ref = net_reference(x, params)
    assert out.shape == (8, 2)
    assert jnp.allclose(out, ref, atol=1e-5, rtol=1e-5), "mismatch vs reference"

    print("KERNEL_OK")
</pallas_src>

<mosaic_0001>
module attributes {stable_mosaic.version = 11 : i64} {
  func.func @_affine_T_kernel(%arg0: i32, %arg1: memref<4xf32, #tpu.memory_space<smem>>, %arg2: memref<2xf32, #tpu.memory_space<smem>>, %arg3: memref<2x8xf32, #tpu.memory_space<vmem>>, %arg4: memref<2x8xf32, #tpu.memory_space<vmem>>) attributes {dimension_semantics = [#tpu.dimension_semantics<parallel>], iteration_bounds = array<i64: 1>, scalar_prefetch = 0 : i64, scratch_operands = 0 : i64, tpu.core_type = #tpu.core_type<tc>, window_params = [{transform_indices = @transform_0, window_bounds = array<i64: 4>}, {transform_indices = @transform_1, window_bounds = array<i64: 2>}, {transform_indices = @transform_2, window_bounds = array<i64: 2, 8>}, {transform_indices = @transform_3, window_bounds = array<i64: 2, 8>}]} {
    %c0 = arith.constant 0 : index
    %c0_0 = arith.constant 0 : index
    %0 = vector.load %arg3[%c0, %c0_0] : memref<2x8xf32, #tpu.memory_space<vmem>>, vector<2x8xf32>
    %1 = vector.extract_strided_slice %0 {offsets = [0, 0], sizes = [1, 8], strides = [1, 1]} : vector<2x8xf32> to vector<1x8xf32>
    %2 = vector.extract_strided_slice %0 {offsets = [1, 0], sizes = [1, 8], strides = [1, 1]} : vector<2x8xf32> to vector<1x8xf32>
    %c0_1 = arith.constant 0 : index
    %3 = memref.load %arg1[%c0_1] : memref<4xf32, #tpu.memory_space<smem>>
    %4 = vector.broadcast %3 : f32 to vector<1x8xf32>
    %5 = arith.mulf %4, %1 : vector<1x8xf32>
    %c2 = arith.constant 2 : index
    %6 = memref.load %arg1[%c2] : memref<4xf32, #tpu.memory_space<smem>>
    %7 = vector.broadcast %6 : f32 to vector<1x8xf32>
    %8 = arith.mulf %7, %2 : vector<1x8xf32>
    %9 = arith.addf %5, %8 : vector<1x8xf32>
    %c0_2 = arith.constant 0 : index
    %10 = memref.load %arg2[%c0_2] : memref<2xf32, #tpu.memory_space<smem>>
    %11 = vector.broadcast %10 : f32 to vector<1x8xf32>
    %12 = arith.addf %9, %11 : vector<1x8xf32>
    %c1 = arith.constant 1 : index
    %13 = memref.load %arg1[%c1] : memref<4xf32, #tpu.memory_space<smem>>
    %14 = vector.broadcast %13 : f32 to vector<1x8xf32>
    %15 = arith.mulf %14, %1 : vector<1x8xf32>
    %c3 = arith.constant 3 : index
    %16 = memref.load %arg1[%c3] : memref<4xf32, #tpu.memory_space<smem>>
    %17 = vector.broadcast %16 : f32 to vector<1x8xf32>
    %18 = arith.mulf %17, %2 : vector<1x8xf32>
    %19 = arith.addf %15, %18 : vector<1x8xf32>
    %c1_3 = arith.constant 1 : index
    %20 = memref.load %arg2[%c1_3] : memref<2xf32, #tpu.memory_space<smem>>
    %21 = vector.broadcast %20 : f32 to vector<1x8xf32>
    %22 = arith.addf %19, %21 : vector<1x8xf32>
    %23 = tpu.concatenate %12, %22 in 0 : vector<1x8xf32>, vector<1x8xf32> -> vector<2x8xf32>
    %c0_4 = arith.constant 0 : index
    %c0_5 = arith.constant 0 : index
    %24 = vector.load %arg4[%c0_4, %c0_5] : memref<2x8xf32, #tpu.memory_space<vmem>>, vector<2x8xf32>
    tpu.vector_store %arg4[%c0_4, %c0_5], %23 {strides = array<i32>} : memref<2x8xf32, #tpu.memory_space<vmem>>, vector<2x8xf32>,
    return
  }
  func.func @transform_0(%arg0: i32) -> i32 {
    %c0_i32 = arith.constant 0 : i32
    %c0_i32_0 = arith.constant 0 : i32
    return %c0_i32 : i32
  }
  func.func @transform_1(%arg0: i32) -> i32 {
    %c0_i32 = arith.constant 0 : i32
    %c0_i32_0 = arith.constant 0 : i32
    return %c0_i32 : i32
  }
  func.func @transform_2(%arg0: i32) -> (i32, i32) {
    %c0_i32 = arith.constant 0 : i32
    %c0_i32_0 = arith.constant 0 : i32
    return %c0_i32, %arg0 : i32, i32
  }
  func.func @transform_3(%arg0: i32) -> (i32, i32) {
    %c0_i32 = arith.constant 0 : i32
    %c0_i32_0 = arith.constant 0 : i32
    return %c0_i32, %arg0 : i32, i32
  }
}

</mosaic_0001>

<bundles_post_ra>
// kernel: net_forward.1
= control target key start
LH: loop header
LB: loop body
LE: loop exit
PB: predicated region body
PF: predicated region fallthrough
CT: control target
= control target key end

     0   :  { %8 = vsyncpa [#allocation5], 0  ;;  %s231_s0 = inlined_call_operand.vmem [shape: f32[4], index: 0, kind: input, shape index: {}]   ;;  %s232_s1 = inlined_call_operand.vmem [shape: f32[2], index: 1, kind: input, shape index: {}]   ;;  %s233_s2 = inlined_call_operand.hbm [shape: f32[2,8], index: 2, kind: input, shape index: {}]   ;;  %s234_s3 = inlined_call_operand.hbm [shape: f32[2,8], index: 3, kind: output, shape index: {}]  }
   0x1   :  { %9 = vsyncpa [#allocation7], 0 }
   0x2   :  { %10 = vsyncpa [#allocation3], 0 }
   0x3   :  { %11 = vsyncpa [#allocation4], 0  ;;  %s17_s14 = sshll.u32 %s231_s0, 4  ;;  %s26_s17 = sshll.u32 %s232_s1, 4  ;;  %s18_s14 = int_to_ptr.vmem [resolvable:$true] %s17_s14  ;;  %s27_s17 = int_to_ptr.vmem [resolvable:$true] %s26_s17 }
   0x4   :  { %s195_s18 = smov [#allocation2]   ;;  %s196_s19 = smov [#allocation6]  }
   0x5   :  { %20 = dma.vmem_to_smem %s18_s14, 16, %s195_s18, [#allocation5]  }
   0x6   :  { %29 = dma.vmem_to_smem %s27_s17, 16, %s196_s19, [#allocation7]  }
   0x7   :  { %s35_s22 = sshll.u32 %s233_s2, 4  ;;  %s197_s23 = smov [#allocation8]   ;;  %s36_s22 = int_to_ptr.hbm [resolvable:$true] %s35_s22 }
   0x8   :  { %s37_s24 = sshll.u32 %s197_s23, 4  ;;  %s38_s24 = int_to_ptr.vmem [resolvable:$true] %s37_s24 }
   0x9   :  { %40 = dma.hbm_to_vmem [thread:$0]  %s36_s22, 32, %s38_s24, [#allocation3]  }
   0xa   :  { %187 = dma.done.wait [#allocation5], 16  }
   0xb   :  { %188 = vsyncadd [#allocation5], 4294967280 }
   0xc   :  { %189 = dma.done.wait [#allocation7], 16  }
   0xd   :  { %190 = vsyncadd [#allocation7], 4294967280 }
   0xe   :  { %191 = dma.done.wait [#allocation3], 32  }
   0xf   :  { %192 = vsyncadd [#allocation3], 4294967264 }
  0x10   :  { %53 = sfence }
  0x11   :  { %s55_s0 = sld [smem:[#allocation2]]  ;;  %v54_v1 = vld [vmem:[#allocation8] sm:$0x3]  ;;  %s198_s2 = smov [#allocation9]   ;;  %vm84_vm0 = vcmask 1040384   ;;  %vm86_vm1 = vcmask 58368  }
  0x12   :  { %s107_s1 = sld [smem:[#allocation2 + $0x2]]  ;;  %s93_s29 = sshll.u32 %s198_s2, 4  ;;  %s94_s29 = int_to_ptr.vmem [resolvable:$true] %s93_s29 }
  0x13   :  { %s108_s25 = sld [smem:[#allocation2 + $0x1]]  ;;  %s95_s5 = sshll.u32 %s234_s3, 4  ;;  %s96_s5 = int_to_ptr.hbm [resolvable:$true] %s95_s5 }
  0x14   :  { %s109_s26 = sld [smem:[#allocation2 + $0x3]] }
  0x15   :  { %s65_s27 = sld [smem:[#allocation6]] }
  0x16   :  { %s110_s28 = sld [smem:[#allocation6 + $0x1]] }
  0x17   :  { %v56_v0 = vstv %s55_s0 }
  0x18   :  { %v59_v2 = vstv %s107_s1  ;;  %v57_v4 = vmul.f32 %v56_v0, %v54_v1 }
  0x19   :  { %v60_v3 = vmul.f32 %v59_v2, %v54_v1  ;;  %v69_v5 = vstv %s108_s25 }
  0x1a   :  { %v72_v7 = vstv %s109_s26  ;;  %v70_v8 = vmul.f32 %v69_v5, %v54_v1 }
  0x1b   :  { %v62_v6 = vrot.slane %v60_v3, 1  ;;  %v73_v9 = vmul.f32 %v72_v7, %v54_v1  ;;  %v66_v12 = vstv %s65_s27 }
  0x1c   :  { %v79_v13 = vstv %s110_s28 }
  0x1d   :  { %v64_v10 = vadd.f32 %v62_v6, %v57_v4  ;;  %v75_v11 = vrot.slane %v73_v9, 1 }
  0x1f   :  { %v77_v14 = vadd.f32 %v75_v11, %v70_v8  ;;  %v67_v15 = vadd.f32 %v66_v12, %v64_v10 }
  0x21   :  { %v80_v16 = vadd.f32 %v79_v13, %v77_v14 }
  0x23   :  { %v82_v17 = vrot.slane %v80_v16, 7 }
  0x25   :  { %v85_v18 = vsel %vm84_vm0, %v67_v15, %v82_v17 }
  0x26   :  { %87 = vst.msk [vmem:[#allocation9] sm:$0x3] %vm86_vm1, %v85_v18 }
  0x27   :  { %98 = dma.vmem_to_hbm [thread:$0]  %s94_s29, 32, %s96_s5, [#allocation4]  }
  0x28   :  { %193 = dma.done.wait [#allocation4], 32  }
  0x29   :  { %194 = vsyncadd [#allocation4], 4294967264 }
  0x2a   :  { %103 = vsyncpa [#allocation3], 1 }
  0x2b   :  { %104 = vsyncpa [#allocation4], 1 }
  0x2c   :  { %105 = vsyncpa [#allocation5], 1 }
  0x2d   :  { %106 = vsyncpa [#allocation7], 1 }

</bundles_post_ra>
